<compile_context>
chip_gen: v7x
topology: tpu7x:2x2x1
jax: 0.10.0
libtpu: 0.0.40
codegen_flags: <defaults>
</compile_context>

<pallas_src>
import numpy as np
import jax
import jax.numpy as jnp
from jax.experimental import pallas as pl
from jax.experimental.pallas import tpu as pltpu


# ----------------------------- Pallas kernel ---------------------------------

def prism_filter_kernel(idx_ref, mat_ref, emb_ref, out_ref):
    # idx_ref:  (num_super,) int32 scalar-prefetch (consumed by the index_maps only)
    # mat_ref:  (GM, 128, 128) bf16 block-diagonal combined DCT->filter->IDCT mats
    # emb_ref:  (GM*128, TN)  bf16 stacked token embeddings (lane-dense hidden dim)
    # out_ref:  (GM*128, TN)  bf16 filtered embeddings
    del idx_ref
    gm, tm, _ = mat_ref.shape
    # Short static unrolled loop (gm <= 8): one full-edge 128x128xTN bf16 MXU
    # matmul per packed group, f32 accumulation.
    for i in range(gm):
        e = emb_ref[i * tm:(i + 1) * tm, :]
        r = jnp.dot(mat_ref[i], e, preferred_element_type=jnp.float32)
        out_ref[i * tm:(i + 1) * tm, :] = r.astype(out_ref.dtype)


def prism_filter(super_idx, unique_mats, emb_stacked, *, tm, tn, gm):
    num_super = int(super_idx.shape[0])
    Sp, D = emb_stacked.shape
    grid = (num_super, D // tn)

    # Dense flops the MXU actually executes (incl. zero off-diagonal blocks).
    flops = 2 * num_super * gm * tm * tm * D
    bytes_accessed = int(unique_mats.size * 2 + 2 * emb_stacked.size * 2)

    # Double-buffered footprint stays well under the v7x 64 MiB physical VMEM.
    block_bytes = gm * tm * tm * 2 + 2 * gm * tm * tn * 2
    vmem_limit = int(min(48 * 1024 * 1024, max(32 * 1024 * 1024, 3 * block_bytes)))

    return pl.pallas_call(
        prism_filter_kernel,
        out_shape=jax.ShapeDtypeStruct((Sp, D), emb_stacked.dtype),
        grid_spec=pltpu.PrefetchScalarGridSpec(
            num_scalar_prefetch=1,
            grid=grid,
            in_specs=[
                # Leading unique-matrix dim is squeezed; the block index along it
                # is the data-dependent dedup index from scalar prefetch.  It is
                # constant in n (inner axis) -> fetched once per super-group.
                pl.BlockSpec((None, gm, tm, tm),
                             lambda s, n, idx: (idx[s], 0, 0, 0)),
                pl.BlockSpec((gm * tm, tn), lambda s, n, idx: (s, n)),
            ],
            out_specs=pl.BlockSpec((gm * tm, tn), lambda s, n, idx: (s, n)),
        ),
        compiler_params=pltpu.CompilerParams(
            dimension_semantics=("parallel", "parallel"),
            vmem_limit_bytes=vmem_limit,
        ),
        cost_estimate=pl.CostEstimate(flops=flops, transcendentals=0,
                                      bytes_accessed=bytes_accessed),
    )(super_idx, unique_mats, emb_stacked)


# ----------------------- host-side glue (parameter setup) --------------------

def dct2_matrix(seq_len, L):
    """Unnormalized DCT-II matrix (matches torch-dct with norm=None), zero-padded to (L, L)."""
    n = np.arange(L)
    k = np.arange(L)
    M = 2.0 * np.cos(np.pi * np.outer(k, 2 * n + 1) / (2.0 * seq_len))
    mask = (k[:, None] < seq_len) & (n[None, :] < seq_len)
    return np.where(mask, M, 0.0).astype(np.float32)


def idct_matrix(seq_len, L):
    """Exact inverse of the unnormalized DCT-II (torch-dct idct), zero-padded to (L, L)."""
    n = np.arange(L)
    k = np.arange(L)
    coef = np.where(k == 0, 1.0, 2.0) / (2.0 * seq_len)
    M = coef[None, :] * np.cos(np.pi * np.outer(2 * n + 1, k) / (2.0 * seq_len))
    mask = (n[:, None] < seq_len) & (k[None, :] < seq_len)
    return np.where(mask, M, 0.0).astype(np.float32)


def adaptive_avg_pool1d(x, out_size):
    """Matches torch.nn.functional.adaptive_avg_pool1d semantics."""
    F = x.shape[0]
    out = np.zeros(out_size, dtype=np.float32)
    for i in range(out_size):
        start = (i * F) // out_size
        end = -(-((i + 1) * F) // out_size)  # ceil
        out[i] = x[start:end].mean()
    return out


def gen_band_filter(filter_size, start_idx, end_idx):
    """PrismEncoder.gen_band_filter equivalent (deterministic parameter init)."""
    f = np.zeros(filter_size, dtype=np.float32)
    f[start_idx:end_idx + 1] = 1.0
    return f


def build_combined_matrix(seq_len, L, frq_filter):
    """M = IDCT @ diag(f) @ DCT, zero-padded to (L, L).  frq_tuning=False -> no sigmoid."""
    f = np.zeros((L, 1), dtype=np.float32)
    f[:seq_len, 0] = adaptive_avg_pool1d(frq_filter, seq_len)
    return (idct_matrix(seq_len, L) @ (f * dct2_matrix(seq_len, L))).astype(np.float32)


def _choose_tn(D):
    """Lane-dense hidden-dim tile: as large as possible (caps per-step overhead)."""
    if D % 128 != 0:
        return D                      # full array dim (allowed by Pallas)
    if D <= 2048:
        return D
    for cand in range(2048, 127, -128):
        if D % cand == 0:
            return cand
    return 128


def prism_encoder_forward(emb_tokens, att_tokens, frq_filter, *, tm=128):
    """Replicates PrismEncoder.forward for frq_tuning=False, emb_pooling=None:
       emb_tokens -> filter(emb_tokens, att_tokens) via the Pallas kernel."""
    B, L, D = emb_tokens.shape
    assert tm % L == 0, "sequence length must divide the 128-row MXU tile"
    G = tm // L                                   # sentences packed per (128,128) mat

    tn = _choose_tn(D)
    num_groups = -(-B // G)
    # Pack GM groups per grid step when D (and hence tn) is small, so each step
    # moves a big lane-dense slab instead of a tiny one.
    gm = max(1, min(8, min(num_groups, 8192 // max(tn, 1))))
    num_super = -(-num_groups // gm)
    B_pad = num_super * gm * G

    seq_lens = np.asarray(att_tokens).sum(axis=-1).astype(np.int64)
    pad_lens = np.zeros(B_pad, dtype=np.int64)
    pad_lens[:B] = seq_lens

    # De-duplicate combined matrices by unique sentence length.
    combined_by_len = {int(s): build_combined_matrix(int(s), L, frq_filter)
                       for s in np.unique(seq_lens) if int(s) > 0}

    # De-duplicate the (gm, tm, tm) super-group stacks by their length signature
    # and index them from the kernel via scalar prefetch.
    uniq = {}
    unique_mats = []
    super_idx = np.zeros(num_super, dtype=np.int32)
    for s in range(num_super):
        lens = tuple(int(pad_lens[(s * gm + j) * G + r])
                     for j in range(gm) for r in range(G))
        uid = uniq.get(lens)
        if uid is None:
            blk = np.zeros((gm, tm, tm), dtype=np.float32)
            for j in range(gm):
                for r in range(G):
                    sl = lens[j * G + r]
                    if sl > 0:
                        blk[j, r * L:(r + 1) * L, r * L:(r + 1) * L] = combined_by_len[sl]
            uid = len(unique_mats)
            uniq[lens] = uid
            unique_mats.append(blk)
        super_idx[s] = uid
    unique_mats = np.stack(unique_mats, axis=0)   # (U, gm, tm, tm)

    # bf16 operands (memory-bound kernel); f32 accumulation inside the kernel.
    mats_bf16 = jnp.asarray(unique_mats, dtype=jnp.bfloat16)
    emb_pad = jnp.zeros((B_pad, L, D), dtype=jnp.bfloat16).at[:B].set(
        emb_tokens.astype(jnp.bfloat16))
    emb_stacked = emb_pad.reshape(B_pad * L, D)

    out = prism_filter(jnp.asarray(super_idx), mats_bf16, emb_stacked,
                       tm=tm, tn=tn, gm=gm)
    out = out.reshape(B_pad, L, D)[:B]
    # att_tokens is returned unchanged (emb_pooling is None)
    return out, att_tokens


# ----------------------------------- main -------------------------------------

if __name__ == "__main__":
    B, L, D = 20, 16, 128         # batch, max seq len, hidden dim (small test shapes)
    FILTER_SIZE = 64              # number of frequency-filter bins

    key = jax.random.PRNGKey(0)
    # synthetic "last_hidden_state" standing in for the HuggingFace LM output
    emb_tokens = jax.random.normal(key, (B, L, D), dtype=jnp.float32)

    # per-sentence lengths (attention masks); repeated lengths exercise dedup
    rng = np.random.RandomState(0)
    seq_lens = rng.randint(4, L + 1, size=B).astype(np.int32)
    seq_lens[0] = L
    att_tokens = (np.arange(L)[None, :] < seq_lens[:, None])

    # deterministic frequency filter parameter: low-pass band filter
    frq_filter = gen_band_filter(FILTER_SIZE, 0, FILTER_SIZE // 2 - 1)

    out, att_out = prism_encoder_forward(emb_tokens, att_tokens, frq_filter)
    out = jax.block_until_ready(out)

    # plain-numpy reference of the same math (sanity check of the kernel)
    emb_np = np.asarray(emb_tokens)
    ref = np.zeros((B, L, D), dtype=np.float32)
    for b in range(B):
        s = int(seq_lens[b])
        C = dct2_matrix(s, L)[:s, :s]
        Dm = idct_matrix(s, L)[:s, :s]
        f = adaptive_avg_pool1d(frq_filter, s)
        freq = C @ emb_np[b, :s, :]
        ref[b, :s, :] = Dm @ (freq * f[:, None])

    # bf16 operands/output -> slightly relaxed tolerance vs the fp32 reference
    np.testing.assert_allclose(np.asarray(out, dtype=np.float32), ref,
                               rtol=2e-2, atol=2e-2)
    assert out.shape == (B, L, D)
    print("KERNEL_OK")
</pallas_src>

<mosaic_0001>
module attributes {stable_mosaic.version = 11 : i64} {
  func.func @prism_filter_kernel(%arg0: i32, %arg1: i32, %arg2: memref<1xi32, #tpu.memory_space<smem>>, %arg3: memref<1x3x128x128xbf16, #tpu.memory_space<vmem>>, %arg4: memref<384x128xbf16, #tpu.memory_space<vmem>>, %arg5: memref<384x128xbf16, #tpu.memory_space<vmem>>) attributes {dimension_semantics = [#tpu.dimension_semantics<parallel>, #tpu.dimension_semantics<parallel>], iteration_bounds = array<i64: 1, 1>, scalar_prefetch = 1 : i64, scratch_operands = 0 : i64, tpu.core_type = #tpu.core_type<tc>, window_params = [{transform_indices = @transform_0, window_bounds = array<i64: 1, 3, 128, 128>}, {transform_indices = @transform_1, window_bounds = array<i64: 384, 128>}, {transform_indices = @transform_2, window_bounds = array<i64: 384, 128>}]} {
    %c0 = arith.constant 0 : index
    %c0_0 = arith.constant 0 : index
    %0 = vector.load %arg4[%c0, %c0_0] : memref<384x128xbf16, #tpu.memory_space<vmem>>, vector<128x128xbf16>
    %c0_1 = arith.constant 0 : index
    %c0_2 = arith.constant 0 : index
    %c0_3 = arith.constant 0 : index
    %c0_4 = arith.constant 0 : index
    %1 = vector.load %arg3[%c0_1, %c0_2, %c0_3, %c0_4] : memref<1x3x128x128xbf16, #tpu.memory_space<vmem>>, vector<1x1x128x128xbf16>
    %2 = vector.shape_cast %1 : vector<1x1x128x128xbf16> to vector<128x128xbf16>
    %cst = arith.constant dense<0.000000e+00> : vector<128x128xf32>
    %3 = tpu.matmul %2, %0, %cst {dimension_numbers = #tpu.dot_dimension_numbers<[1], [0], [0], [1], [0, 0, 1, 1], [], []>} : vector<128x128xbf16>, vector<128x128xbf16>, vector<128x128xf32> -> vector<128x128xf32>
    %4 = arith.truncf %3 : vector<128x128xf32> to vector<128x128xbf16>
    %c0_5 = arith.constant 0 : index
    %c0_6 = arith.constant 0 : index
    %5 = vector.load %arg5[%c0_5, %c0_6] : memref<384x128xbf16, #tpu.memory_space<vmem>>, vector<128x128xbf16>
    tpu.vector_store %arg5[%c0_5, %c0_6], %4 {strides = array<i32>} : memref<384x128xbf16, #tpu.memory_space<vmem>>, vector<128x128xbf16>,
    %c128 = arith.constant 128 : index
    %c0_7 = arith.constant 0 : index
    %6 = vector.load %arg4[%c128, %c0_7] : memref<384x128xbf16, #tpu.memory_space<vmem>>, vector<128x128xbf16>
    %c0_8 = arith.constant 0 : index
    %c1 = arith.constant 1 : index
    %c0_9 = arith.constant 0 : index
    %c0_10 = arith.constant 0 : index
    %7 = vector.load %arg3[%c0_8, %c1, %c0_9, %c0_10] : memref<1x3x128x128xbf16, #tpu.memory_space<vmem>>, vector<1x1x128x128xbf16>
    %8 = vector.shape_cast %7 : vector<1x1x128x128xbf16> to vector<128x128xbf16>
    %cst_11 = arith.constant dense<0.000000e+00> : vector<128x128xf32>
    %9 = tpu.matmul %8, %6, %cst_11 {dimension_numbers = #tpu.dot_dimension_numbers<[1], [0], [0], [1], [0, 0, 1, 1], [], []>} : vector<128x128xbf16>, vector<128x128xbf16>, vector<128x128xf32> -> vector<128x128xf32>
    %10 = arith.truncf %9 : vector<128x128xf32> to vector<128x128xbf16>
    %c128_12 = arith.constant 128 : index
    %c0_13 = arith.constant 0 : index
    %11 = vector.load %arg5[%c128_12, %c0_13] : memref<384x128xbf16, #tpu.memory_space<vmem>>, vector<128x128xbf16>
    tpu.vector_store %arg5[%c128_12, %c0_13], %10 {strides = array<i32>} : memref<384x128xbf16, #tpu.memory_space<vmem>>, vector<128x128xbf16>,
    %c256 = arith.constant 256 : index
    %c0_14 = arith.constant 0 : index
    %12 = vector.load %arg4[%c256, %c0_14] : memref<384x128xbf16, #tpu.memory_space<vmem>>, vector<128x128xbf16>
    %c0_15 = arith.constant 0 : index
    %c2 = arith.constant 2 : index
    %c0_16 = arith.constant 0 : index
    %c0_17 = arith.constant 0 : index
    %13 = vector.load %arg3[%c0_15, %c2, %c0_16, %c0_17] : memref<1x3x128x128xbf16, #tpu.memory_space<vmem>>, vector<1x1x128x128xbf16>
    %14 = vector.shape_cast %13 : vector<1x1x128x128xbf16> to vector<128x128xbf16>
    %cst_18 = arith.constant dense<0.000000e+00> : vector<128x128xf32>
    %15 = tpu.matmul %14, %12, %cst_18 {dimension_numbers = #tpu.dot_dimension_numbers<[1], [0], [0], [1], [0, 0, 1, 1], [], []>} : vector<128x128xbf16>, vector<128x128xbf16>, vector<128x128xf32> -> vector<128x128xf32>
    %16 = arith.truncf %15 : vector<128x128xf32> to vector<128x128xbf16>
    %c256_19 = arith.constant 256 : index
    %c0_20 = arith.constant 0 : index
    %17 = vector.load %arg5[%c256_19, %c0_20] : memref<384x128xbf16, #tpu.memory_space<vmem>>, vector<128x128xbf16>
    tpu.vector_store %arg5[%c256_19, %c0_20], %16 {strides = array<i32>} : memref<384x128xbf16, #tpu.memory_space<vmem>>, vector<128x128xbf16>,
    return
  }
  func.func @transform_0(%arg0: i32, %arg1: i32, %arg2: memref<1xi32, #tpu.memory_space<smem>>) -> (i32, i32, i32, i32) {
    %0 = arith.index_cast %arg0 : i32 to index
    %1 = memref.load %arg2[%0] : memref<1xi32, #tpu.memory_space<smem>>
    %c0_i32 = arith.constant 0 : i32
    %c0_i32_0 = arith.constant 0 : i32
    %c0_i32_1 = arith.constant 0 : i32
    %c0_i32_2 = arith.constant 0 : i32
    return %1, %c0_i32, %c0_i32_0, %c0_i32_1 : i32, i32, i32, i32
  }
  func.func @transform_1(%arg0: i32, %arg1: i32, %arg2: memref<1xi32, #tpu.memory_space<smem>>) -> (i32, i32) {
    %c0_i32 = arith.constant 0 : i32
    return %arg0, %arg1 : i32, i32
  }
  func.func @transform_2(%arg0: i32, %arg1: i32, %arg2: memref<1xi32, #tpu.memory_space<smem>>) -> (i32, i32) {
    %c0_i32 = arith.constant 0 : i32
    return %arg0, %arg1 : i32, i32
  }
}

</mosaic_0001>

<bundles_post_ra>
// kernel: tpu_custom_call.1
= control target key start
LH: loop header
LB: loop body
LE: loop exit
PB: predicated region body
PF: predicated region fallthrough
CT: control target
= control target key end

     0   :  { %9 = vsyncpa [#allocation5], 0  ;;  %s1631_s0 = inlined_call_operand.<no memory space> [shape: s32[1], index: 0, kind: input, shape index: {}]   ;;  %s1632_s1 = inlined_call_operand.hbm [shape: bf16[1,3,128,128], index: 1, kind: input, shape index: {}]   ;;  %s1633_s2 = inlined_call_operand.hbm [shape: bf16[384,128], index: 2, kind: input, shape index: {}]   ;;  %s1634_s3 = inlined_call_operand.hbm [shape: bf16[384,128], index: 3, kind: output, shape index: {}]  }
   0x1   :  { %10 = vsyncpa [#allocation8], 0 }
   0x2   :  { %11 = vsyncpa [#allocation6], 0  ;;  %s1433_s14 = smul.u32 3072, %s1631_s0  ;;  %s1561_s15 = smov [#allocation4]  }
   0x3   :  { %s21_s16 = sshll.u32 %s1561_s15, 4  ;;  %s1489_s23 = scalar_lea.hbm %s1632_s1, 3072  ;;  %s22_s16 = int_to_ptr.vmem [resolvable:$true] %s21_s16 }
   0x4   :  { %s20_s19 = scalar_lea.hbm %s1632_s1, %s1433_s14 }
   0x5   :  { %s1487_s20 = scalar_lea.hbm %s20_s19, 3072  ;;  %p1490_p1 = scmp.lt.u32.totalorder %s20_s19, %s1632_s1 }
   0x6   :  { %p1488_p0 = scmp.ne.s32.totalorder %s20_s19, %s1487_s20  ;;  %p1491_p2 = scmp.lt.u32.totalorder %s1489_s23, %s1487_s20 }
   0x7   :  { %p1493_p4 = scmp.lt.u32.totalorder %s1487_s20, %s20_s19 }
   0x8   :  { %p1492_p3 = por %p1491_p2, %p1490_p1 }
   0xa   :  { %p1494_p5 = por %p1493_p4, %p1492_p3 }
   0xc   :  { %p1495_p6 = pnand %p1494_p5, %p1488_p0 }
   0xe   :  { %1498 = shalt.err (!%p1495_p6)
}
   0xf   :  { %s1499_s0 = scalar_lea.vmem %s22_s16, 3072  ;;  %p1504_p8 = scmp.lt.s32.totalorder %s22_s16, %s22_s16 }
  0x10   :  { %p1500_p7 = scmp.ne.s32.totalorder %s22_s16, %s1499_s0  ;;  %p1505_p9 = scmp.lt.s32.totalorder %s1499_s0, %s1499_s0 }
  0x12   :  { %p1506_p10 = por %p1505_p9, %p1504_p8 }
  0x14   :  { %p1507_p11 = pnand %p1506_p10, %p1500_p7 }
  0x16   :  { %1510 = shalt.err (!%p1507_p11)
}
  0x17   :  { %s1562_s26 = smov 64   ;;  %s1563_s27 = smov 4  }
  0x18   :  { %27 = dma.hbm_to_vmem [thread:$0]  %s20_s19, 3072, %s22_s16, [#allocation5], %s1562_s26, %s1562_s26, %s1563_s27  }
  0x19   :  { %s1564_s1 = smov [#allocation7]   ;;  %s1511_s4 = scalar_lea.hbm %s1633_s2, 3072 }
  0x1a   :  { %s33_s28 = sshll.u32 %s1564_s1, 4  ;;  %p1512_p12 = scmp.ne.s32.totalorder %s1633_s2, %s1511_s4  ;;  %s34_s28 = int_to_ptr.vmem [resolvable:$true] %s33_s28 }
  0x1b   :  { %p1515_p13 = scmp.lt.u32.totalorder %s1511_s4, %s1633_s2 }
  0x1d   :  { %p1517_p0 = pnand %p1515_p13, %p1512_p12 }
  0x1f   :  { %1520 = shalt.err (!%p1517_p0)
}
  0x20   :  { %s1521_s9 = scalar_lea.vmem %s34_s28, 3072  ;;  %p1526_p2 = scmp.lt.s32.totalorder %s34_s28, %s34_s28 }
  0x21   :  { %p1522_p1 = scmp.ne.s32.totalorder %s34_s28, %s1521_s9  ;;  %p1527_p3 = scmp.lt.s32.totalorder %s1521_s9, %s1521_s9 }
  0x23   :  { %p1528_p4 = por %p1527_p3, %p1526_p2 }
  0x25   :  { %p1529_p5 = pnand %p1528_p4, %p1522_p1 }
  0x27   :  { %1532 = shalt.err (!%p1529_p5)
}
  0x28   :  { %39 = dma.hbm_to_vmem [thread:$0]  %s1633_s2, 3072, %s34_s28, [#allocation8], %s1562_s26, %s1562_s26, %s1563_s27  }
  0x29   :  { %1555 = dma.done.wait [#allocation5], 3072  }
  0x2a   :  { %1556 = vsyncadd [#allocation5], 4294964224 }
  0x2b   :  { %1557 = dma.done.wait [#allocation8], 3072  }
  0x2c   :  { %1558 = vsyncadd [#allocation8], 4294964224  ;;  %v1439_v0 = vld [vmem:[#allocation7] sm:$0xff]   ;;  %v1441_v2 = vld [vmem:[#allocation7 + $0x8] sm:$0xff]   ;;  %s1565_s2 = smov [#allocation9]  }
  0x2d   :  { %v1440_v1 = vld [vmem:[#allocation7 + $0x40] sm:$0xff]   ;;  %1321 = vmatprep.subr.bf16.mxu0 %v1439_v0  ;;  %v1442_v3 = vld [vmem:[#allocation7 + $0x48] sm:$0xff]   ;;  %v1443_v4 = vld [vmem:[#allocation7 + $0x10] sm:$0xff]   ;;  %s970_s12 = sshll.u32 %s1565_s2, 4  ;;  %s971_s12 = int_to_ptr.vmem [resolvable:$true] %s970_s12 }
  0x2e   :  { %1353 = vmatprep.subr.bf16.mxu1 %v1440_v1  ;;  %1322 = vmatpush3.bf16.msra.mxu0 %v1439_v0  ;;  %v1444_v5 = vld [vmem:[#allocation7 + $0x50] sm:$0xff]   ;;  %v1445_v6 = vld [vmem:[#allocation7 + $0x18] sm:$0xff]   ;;  %v1447_v8 = vld [vmem:[#allocation7 + $0x20] sm:$0xff]   ;;  %s1533_s13 = scalar_lea.vmem %s971_s12, 3072  ;;  %p1538_p7 = scmp.lt.s32.totalorder %s971_s12, %s971_s12 }
  0x2f   :  { %1354 = vmatpush3.bf16.msra.mxu1 %v1440_v1  ;;  %1323 = vmatprep.subr.bf16.mxu0 %v1441_v2  ;;  %v1446_v7 = vld [vmem:[#allocation7 + $0x58] sm:$0xff]   ;;  %v1448_v9 = vld [vmem:[#allocation7 + $0x60] sm:$0xff]   ;;  %v1449_v10 = vld [vmem:[#allocation7 + $0x28] sm:$0xff]   ;;  %p1534_p6 = scmp.ne.s32.totalorder %s971_s12, %s1533_s13  ;;  %p1539_p8 = scmp.lt.s32.totalorder %s1533_s13, %s1533_s13 }
  0x30   :  { %1355 = vmatprep.subr.bf16.mxu1 %v1442_v3  ;;  %v1450_v11 = vld [vmem:[#allocation7 + $0x68] sm:$0xff]   ;;  %v1455_v12 = vld [vmem:[#allocation4] sm:$0xff]   ;;  %v1451_v14 = vld [vmem:[#allocation7 + $0x30] sm:$0xff]  }
  0x31   :  { %v1456_v13 = vld [vmem:[#allocation4 + $0x40] sm:$0xff]   ;;  %1337 = vmatprep.mubr.bf16.mxu0 %v1455_v12  ;;  %v1452_v15 = vld [vmem:[#allocation7 + $0x70] sm:$0xff]   ;;  %v1453_v16 = vld [vmem:[#allocation7 + $0x38] sm:$0xff]   ;;  %p1540_p9 = por %p1539_p8, %p1538_p7 }
  0x32   :  { %1324 = vmatpush3.bf16.msra.mxu0 %v1441_v2  ;;  %1369 = vmatprep.mubr.bf16.mxu1 %v1456_v13  ;;  %v1454_v17 = vld [vmem:[#allocation7 + $0x78] sm:$0xff]   ;;  %v1459_v18 = vld [vmem:[#allocation7 + $0x80] sm:$0xff]   ;;  %v1457_v19 = vld [vmem:[#allocation4 + $0x8] sm:$0xff]  }
  0x33   :  { %1356 = vmatpush3.bf16.msra.mxu1 %v1442_v3  ;;  %1325 = vmatprep.subr.bf16.mxu0 %v1443_v4  ;;  %v1458_v20 = vld [vmem:[#allocation4 + $0x48] sm:$0xff]   ;;  %v1461_v22 = vld [vmem:[#allocation4 + $0x10] sm:$0xff]   ;;  %v1463_v25 = vld [vmem:[#allocation4 + $0x18] sm:$0xff]   ;;  %p1541_p10 = pnand %p1540_p9, %p1534_p6 }
  0x34   :  { %1357 = vmatprep.subr.bf16.mxu1 %v1444_v5  ;;  %v1460_v21 = vld [vmem:[#allocation7 + $0x88] sm:$0xff]   ;;  %v1462_v23 = vld [vmem:[#allocation4 + $0x50] sm:$0xff]   ;;  %v1464_v26 = vld [vmem:[#allocation4 + $0x58] sm:$0xff]  }
  0x35   :  { %v1465_v24 = vld [vmem:[#allocation7 + $0x90] sm:$0xff]   ;;  %v1466_v27 = vld [vmem:[#allocation7 + $0x98] sm:$0xff]   ;;  %v1467_v28 = vld [vmem:[#allocation4 + $0x20] sm:$0xff]  }
  0x36   :  { %1326 = vmatpush3.bf16.msra.mxu0 %v1443_v4  ;;  %v1468_v29 = vld [vmem:[#allocation4 + $0x60] sm:$0xff]   ;;  %v1469_v31 = vld [vmem:[#allocation4 + $0x28] sm:$0xff]   ;;  %v1473_v34 = vld [vmem:[#allocation4 + $0x30] sm:$0xff]  }
  0x37   :  { %1358 = vmatpush3.bf16.msra.mxu1 %v1444_v5  ;;  %1327 = vmatprep.subr.bf16.mxu0 %v1445_v6  ;;  %v1471_v30 = vld [vmem:[#allocation7 + $0xa0] sm:$0xff]   ;;  %v1470_v32 = vld [vmem:[#allocation4 + $0x68] sm:$0xff]   ;;  %v1474_v35 = vld [vmem:[#allocation4 + $0x70] sm:$0xff]  }
  0x38   :  { %1359 = vmatprep.subr.bf16.mxu1 %v1446_v7  ;;  %v1472_v33 = vld [vmem:[#allocation7 + $0xa8] sm:$0xff]   ;;  %v1477_v36 = vld [vmem:[#allocation7 + $0xb0] sm:$0xff]   ;;  %v1475_v37 = vld [vmem:[#allocation4 + $0x38] sm:$0xff]  }
  0x39   :  { %v1476_v38 = vld [vmem:[#allocation4 + $0x78] sm:$0xff]   ;;  %v1479_v40 = vld [vmem:[#allocation4 + $0x80] sm:$0xff]   ;;  %v1481_v42 = vld [vmem:[#allocation4 + $0x88] sm:$0xff]  }
  0x3a   :  { %1328 = vmatpush3.bf16.msra.mxu0 %v1445_v6  ;;  %v1478_v39 = vld [vmem:[#allocation7 + $0xb8] sm:$0xff]   ;;  %v1480_v41 = vld [vmem:[#allocation4 + $0xa0] sm:$0xff]   ;;  %v1482_v43 = vld [vmem:[#allocation4 + $0xa8] sm:$0xff]  }
  0x3b   :  { %1360 = vmatpush3.bf16.msra.mxu1 %v1446_v7  ;;  %1329 = vmatprep.subr.bf16.mxu0 %v1447_v8  ;;  %v1483_v44 = vld [vmem:[#allocation4 + $0x90] sm:$0xff]   ;;  %v1485_v46 = vld [vmem:[#allocation4 + $0x98] sm:$0xff]  }
  0x3c   :  { %1361 = vmatprep.subr.bf16.mxu1 %v1448_v9  ;;  %v1484_v45 = vld [vmem:[#allocation4 + $0xb0] sm:$0xff]   ;;  %v1486_v47 = vld [vmem:[#allocation4 + $0xb8] sm:$0xff]  }
  0x3e   :  { %1330 = vmatpush3.bf16.msra.mxu0 %v1447_v8 }
  0x3f   :  { %1362 = vmatpush3.bf16.msra.mxu1 %v1448_v9  ;;  %1331 = vmatprep.subr.bf16.mxu0 %v1449_v10 }
  0x40   :  { %1363 = vmatprep.subr.bf16.mxu1 %v1450_v11 }
  0x42   :  { %1332 = vmatpush3.bf16.msra.mxu0 %v1449_v10 }
  0x43   :  { %1364 = vmatpush3.bf16.msra.mxu1 %v1450_v11  ;;  %1333 = vmatprep.subr.bf16.mxu0 %v1451_v14 }
  0x44   :  { %1365 = vmatprep.subr.bf16.mxu1 %v1452_v15 }
  0x46   :  { %1334 = vmatpush3.bf16.msra.mxu0 %v1451_v14 }
  0x47   :  { %1366 = vmatpush3.bf16.msra.mxu1 %v1452_v15  ;;  %1335 = vmatprep.subr.bf16.mxu0 %v1453_v16 }
  0x48   :  { %1367 = vmatprep.subr.bf16.mxu1 %v1454_v17 }
  0x4a   :  { %1336 = vmatpush3.bf16.msra.mxu0 %v1453_v16 }
  0x4b   :  { %1368 = vmatpush3.bf16.msra.mxu1 %v1454_v17  ;;  %1385 = vmatprep.subr.bf16.mxu0 %v1459_v18 }
  0x4c   :  { %1417 = vmatprep.subr.bf16.mxu1 %v1459_v18 }
  0x4d   :  { %1338 = vmatmul.mubr.bf16.vlgmr.msra.gmra.mrb[0].mxu0 %v1457_v19 }
  0x4e   :  { %1370 = vmatmul.mubr.bf16.vlgmr.msra.gmra.mrb[0].mxu1 %v1458_v20  ;;  %1386 = vmatpush3.bf16.msra.mxu0 %v1459_v18 }
  0x4f   :  { %1425 = vmatpush3.bf16.msra.mxu1 %v1459_v18  ;;  %1387 = vmatprep.subr.bf16.mxu0 %v1460_v21 }
  0x50   :  { %1418 = vmatprep.subr.bf16.mxu1 %v1460_v21  ;;  %1341 = vmatprep.mubr.bf16.mxu0 %v1461_v22 }
  0x51   :  { %1373 = vmatprep.mubr.bf16.mxu1 %v1462_v23 }
  0x52   :  { %1388 = vmatpush3.bf16.msra.mxu0 %v1460_v21 }
  0x53   :  { %1426 = vmatpush3.bf16.msra.mxu1 %v1460_v21  ;;  %1389 = vmatprep.subr.bf16.mxu0 %v1465_v24 }
  0x54   :  { %1419 = vmatprep.subr.bf16.mxu1 %v1465_v24 }
  0x55   :  { %1342 = vmatmul.mubr.bf16.gmra.mrb[4].mxu0 %v1463_v25 }
  0x56   :  { %1374 = vmatmul.mubr.bf16.gmra.mrb[4].mxu1 %v1464_v26  ;;  %1390 = vmatpush3.bf16.msra.mxu0 %v1465_v24 }
  0x57   :  { %1427 = vmatpush3.bf16.msra.mxu1 %v1465_v24  ;;  %1391 = vmatprep.subr.bf16.mxu0 %v1466_v27 }
  0x58   :  { %1420 = vmatprep.subr.bf16.mxu1 %v1466_v27  ;;  %1345 = vmatprep.mubr.bf16.mxu0 %v1467_v28 }
  0x59   :  { %1377 = vmatprep.mubr.bf16.mxu1 %v1468_v29 }
  0x5a   :  { %1392 = vmatpush3.bf16.msra.mxu0 %v1466_v27 }
  0x5b   :  { %1428 = vmatpush3.bf16.msra.mxu1 %v1466_v27  ;;  %1393 = vmatprep.subr.bf16.mxu0 %v1471_v30 }
  0x5c   :  { %1421 = vmatprep.subr.bf16.mxu1 %v1471_v30 }
  0x5d   :  { %1346 = vmatmul.mubr.bf16.gmra.mrb[8].mxu0 %v1469_v31 }
  0x5e   :  { %1378 = vmatmul.mubr.bf16.gmra.mrb[8].mxu1 %v1470_v32  ;;  %1394 = vmatpush3.bf16.msra.mxu0 %v1471_v30 }
  0x5f   :  { %1429 = vmatpush3.bf16.msra.mxu1 %v1471_v30  ;;  %1395 = vmatprep.subr.bf16.mxu0 %v1472_v33 }
  0x60   :  { %1422 = vmatprep.subr.bf16.mxu1 %v1472_v33  ;;  %1349 = vmatprep.mubr.bf16.mxu0 %v1473_v34 }
  0x61   :  { %1381 = vmatprep.mubr.bf16.mxu1 %v1474_v35 }
  0x62   :  { %1396 = vmatpush3.bf16.msra.mxu0 %v1472_v33 }
  0x63   :  { %1430 = vmatpush3.bf16.msra.mxu1 %v1472_v33  ;;  %1397 = vmatprep.subr.bf16.mxu0 %v1477_v36 }
  0x64   :  { %1423 = vmatprep.subr.bf16.mxu1 %v1477_v36 }
  0x65   :  { %1350 = vmatmul.mubr.bf16.gmra.mrb[12].mxu0 %v1475_v37 }
  0x66   :  { %1382 = vmatmul.mubr.bf16.gmra.mrb[12].mxu1 %v1476_v38  ;;  %1398 = vmatpush3.bf16.msra.mxu0 %v1477_v36 }
  0x67   :  { %1431 = vmatpush3.bf16.msra.mxu1 %v1477_v36  ;;  %1399 = vmatprep.subr.bf16.mxu0 %v1478_v39 }
  0x68   :  { %1424 = vmatprep.subr.bf16.mxu1 %v1478_v39  ;;  %1401 = vmatprep.mubr.bf16.mxu0 %v1479_v40 }
  0x69   :  { %1409 = vmatprep.mubr.bf16.mxu1 %v1480_v41 }
  0x6a   :  { %1400 = vmatpush3.bf16.msra.mxu0 %v1478_v39 }
  0x6b   :  { %1432 = vmatpush3.bf16.msra.mxu1 %v1478_v39 }
  0x6d   :  { %1402 = vmatmul.mubr.bf16.vlgmr.msra.gmra.mrb[16].mxu0 %v1481_v42 }
  0x6e   :  { %1410 = vmatmul.mubr.bf16.vlgmr.msra.gmra.mrb[16].mxu1 %v1482_v43  ;;  %1405 = vmatprep.mubr.bf16.mxu0 %v1483_v44 }
  0x6f   :  { %1413 = vmatprep.mubr.bf16.mxu1 %v1484_v45 }
  0x75   :  { %1406 = vmatmul.mubr.bf16.gmra.mrb[20].mxu0 %v1485_v46 }
  0x76   :  { %1414 = vmatmul.mubr.bf16.gmra.mrb[20].mxu1 %v1486_v47 }
 0x120   :  { %v1339_v48 = vpop.f32.mrb[0].mxu0 }
 0x121   :  { %v1371_v49 = vpop.f32.mrb[0].mxu1  ;;  %v210_v50 = vpop.f32.mrb[1].mxu0 }
 0x122   :  { %v516_v51 = vpop.f32.mrb[1].mxu1  ;;  %v1340_v52 = vpop.f32.mrb[2].mxu0 }
 0x123   :  { %v1138_v53 = vpack.c.bf16 %v1340_v52, %v1339_v48  ;;  %v1372_v54 = vpop.f32.mrb[2].mxu1  ;;  %v213_v55 = vpop.f32.mrb[3].mxu0 }
 0x124   :  { %v1178_v56 = vpack.c.bf16 %v1372_v54, %v1371_v49  ;;  %v1133_v57 = vpack.c.bf16 %v213_v55, %v210_v50  ;;  %v519_v58 = vpop.f32.mrb[3].mxu1 }
 0x125   :  { %1250 = vst [vmem:[#allocation9 + $0x8] sm:$0xff] %v1138_v53   ;;  %v1173_v59 = vpack.c.bf16 %v519_v58, %v516_v51 }
 0x126   :  { %1258 = vst [vmem:[#allocation9 + $0x48] sm:$0xff] %v1178_v56   ;;  %1134 = vst [vmem:[#allocation9] sm:$0xff] %v1133_v57  }
 0x127   :  { %1257 = vst [vmem:[#allocation9 + $0x40] sm:$0xff] %v1173_v59  }
 0x128   :  { %v1343_v60 = vpop.f32.mrb[4].mxu0 }
 0x129   :  { %v1375_v61 = vpop.f32.mrb[4].mxu1  ;;  %v226_v62 = vpop.f32.mrb[5].mxu0 }
 0x12a   :  { %v532_v63 = vpop.f32.mrb[5].mxu1  ;;  %v1344_v0 = vpop.f32.mrb[6].mxu0 }
 0x12b   :  { %v1148_v1 = vpack.c.bf16 %v1344_v0, %v1343_v60  ;;  %v1376_v2 = vpop.f32.mrb[6].mxu1  ;;  %v229_v3 = vpop.f32.mrb[7].mxu0 }
 0x12c   :  { %v1188_v4 = vpack.c.bf16 %v1376_v2, %v1375_v61  ;;  %v1143_v5 = vpack.c.bf16 %v229_v3, %v226_v62  ;;  %v535_v6 = vpop.f32.mrb[7].mxu1 }
 0x12d   :  { %1252 = vst [vmem:[#allocation9 + $0x18] sm:$0xff] %v1148_v1   ;;  %v1183_v7 = vpack.c.bf16 %v535_v6, %v532_v63 }
 0x12e   :  { %1260 = vst [vmem:[#allocation9 + $0x58] sm:$0xff] %v1188_v4   ;;  %1251 = vst [vmem:[#allocation9 + $0x10] sm:$0xff] %v1143_v5  }
 0x12f   :  { %1259 = vst [vmem:[#allocation9 + $0x50] sm:$0xff] %v1183_v7  }
 0x130   :  { %v1347_v8 = vpop.f32.mrb[8].mxu0 }
 0x131   :  { %v1379_v9 = vpop.f32.mrb[8].mxu1  ;;  %v242_v10 = vpop.f32.mrb[9].mxu0 }
 0x132   :  { %v548_v11 = vpop.f32.mrb[9].mxu1  ;;  %v1348_v12 = vpop.f32.mrb[10].mxu0 }
 0x133   :  { %v1158_v13 = vpack.c.bf16 %v1348_v12, %v1347_v8  ;;  %v1380_v14 = vpop.f32.mrb[10].mxu1  ;;  %v245_v15 = vpop.f32.mrb[11].mxu0 }
 0x134   :  { %v1198_v16 = vpack.c.bf16 %v1380_v14, %v1379_v9  ;;  %v1153_v17 = vpack.c.bf16 %v245_v15, %v242_v10  ;;  %v551_v18 = vpop.f32.mrb[11].mxu1 }
 0x135   :  { %1254 = vst [vmem:[#allocation9 + $0x28] sm:$0xff] %v1158_v13   ;;  %v1193_v19 = vpack.c.bf16 %v551_v18, %v548_v11 }
 0x136   :  { %1262 = vst [vmem:[#allocation9 + $0x68] sm:$0xff] %v1198_v16   ;;  %1253 = vst [vmem:[#allocation9 + $0x20] sm:$0xff] %v1153_v17  }
 0x137   :  { %1261 = vst [vmem:[#allocation9 + $0x60] sm:$0xff] %v1193_v19  }
 0x138   :  { %v1351_v20 = vpop.f32.mrb[12].mxu0 }
 0x139   :  { %v1383_v21 = vpop.f32.mrb[12].mxu1  ;;  %v258_v22 = vpop.f32.mrb[13].mxu0 }
 0x13a   :  { %v564_v23 = vpop.f32.mrb[13].mxu1  ;;  %v1352_v24 = vpop.f32.mrb[14].mxu0 }
 0x13b   :  { %v1168_v25 = vpack.c.bf16 %v1352_v24, %v1351_v20  ;;  %v1384_v26 = vpop.f32.mrb[14].mxu1  ;;  %v261_v27 = vpop.f32.mrb[15].mxu0 }
 0x13c   :  { %v1208_v28 = vpack.c.bf16 %v1384_v26, %v1383_v21  ;;  %v1163_v29 = vpack.c.bf16 %v261_v27, %v258_v22  ;;  %v567_v30 = vpop.f32.mrb[15].mxu1 }
 0x13d   :  { %1256 = vst [vmem:[#allocation9 + $0x38] sm:$0xff] %v1168_v25   ;;  %v1203_v31 = vpack.c.bf16 %v567_v30, %v564_v23 }
 0x13e   :  { %1264 = vst [vmem:[#allocation9 + $0x78] sm:$0xff] %v1208_v28   ;;  %1255 = vst [vmem:[#allocation9 + $0x30] sm:$0xff] %v1163_v29  }
 0x13f   :  { %1263 = vst [vmem:[#allocation9 + $0x70] sm:$0xff] %v1203_v31  }
 0x140   :  { %v1403_v32 = vpop.f32.mrb[16].mxu0 }
 0x141   :  { %v1411_v33 = vpop.f32.mrb[16].mxu1  ;;  %v822_v34 = vpop.f32.mrb[17].mxu0 }
 0x142   :  { %v854_v35 = vpop.f32.mrb[17].mxu1  ;;  %v1404_v36 = vpop.f32.mrb[18].mxu0 }
 0x143   :  { %v1218_v37 = vpack.c.bf16 %v1404_v36, %v1403_v32  ;;  %v1412_v38 = vpop.f32.mrb[18].mxu1  ;;  %v825_v39 = vpop.f32.mrb[19].mxu0 }
 0x144   :  { %v1238_v40 = vpack.c.bf16 %v1412_v38, %v1411_v33  ;;  %v1213_v41 = vpack.c.bf16 %v825_v39, %v822_v34  ;;  %v857_v42 = vpop.f32.mrb[19].mxu1 }
 0x145   :  { %1266 = vst [vmem:[#allocation9 + $0x88] sm:$0xff] %v1218_v37   ;;  %v1233_v43 = vpack.c.bf16 %v857_v42, %v854_v35 }
 0x146   :  { %1270 = vst [vmem:[#allocation9 + $0xa8] sm:$0xff] %v1238_v40   ;;  %1265 = vst [vmem:[#allocation9 + $0x80] sm:$0xff] %v1213_v41  }
 0x147   :  { %1269 = vst [vmem:[#allocation9 + $0xa0] sm:$0xff] %v1233_v43  }
 0x148   :  { %v1407_v44 = vpop.f32.mrb[20].mxu0 }
 0x149   :  { %v1415_v45 = vpop.f32.mrb[20].mxu1  ;;  %v838_v46 = vpop.f32.mrb[21].mxu0 }
 0x14a   :  { %v870_v47 = vpop.f32.mrb[21].mxu1  ;;  %v1408_v48 = vpop.f32.mrb[22].mxu0 }
 0x14b   :  { %v1228_v49 = vpack.c.bf16 %v1408_v48, %v1407_v44  ;;  %v1416_v50 = vpop.f32.mrb[22].mxu1  ;;  %v841_v51 = vpop.f32.mrb[23].mxu0 }
 0x14c   :  { %v1248_v52 = vpack.c.bf16 %v1416_v50, %v1415_v45  ;;  %v1223_v53 = vpack.c.bf16 %v841_v51, %v838_v46  ;;  %v873_v54 = vpop.f32.mrb[23].mxu1 }
 0x14d   :  { %1268 = vst [vmem:[#allocation9 + $0x98] sm:$0xff] %v1228_v49   ;;  %v1243_v55 = vpack.c.bf16 %v873_v54, %v870_v47 }
 0x14e   :  { %1272 = vst [vmem:[#allocation9 + $0xb8] sm:$0xff] %v1248_v52   ;;  %1267 = vst [vmem:[#allocation9 + $0x90] sm:$0xff] %v1223_v53  }
 0x14f   :  { %1271 = vst [vmem:[#allocation9 + $0xb0] sm:$0xff] %v1243_v55  }
 0x150   :  { %1544 = shalt.err (!%p1541_p10)
}
 0x151   :  { %s1545_s16 = scalar_lea.hbm %s1634_s3, 3072 }
 0x152   :  { %p1546_p11 = scmp.ne.s32.totalorder %s1634_s3, %s1545_s16  ;;  %p1549_p12 = scmp.lt.u32.totalorder %s1545_s16, %s1634_s3 }
 0x154   :  { %p1551_p13 = pnand %p1549_p12, %p1546_p11 }
 0x156   :  { %1554 = shalt.err (!%p1551_p13)
}
 0x157   :  { %976 = dma.vmem_to_hbm [thread:$0]  %s971_s12, 3072, %s1634_s3, [#allocation6], %s1562_s26, %s1562_s26, %s1563_s27  }
 0x158   :  { %1559 = dma.done.wait [#allocation6], 3072  }
 0x159   :  { %1560 = vsyncadd [#allocation6], 4294964224 }
 0x15a   :  { %980 = vsyncpa [#allocation5], 1 }
 0x15b   :  { %981 = vsyncpa [#allocation8], 1 }
 0x15c   :  { %982 = vsyncpa [#allocation6], 1 }

</bundles_post_ra>
